<compile_context>
chip_gen: v5e
topology: v5e:2x2
jax: 0.10.0
libtpu: 0.0.40
codegen_flags: <defaults>
</compile_context>

<pallas_src>
import functools

import numpy as np
import jax
import jax.numpy as jnp
from jax import lax
from jax.experimental import pallas as pl
from jax.experimental.pallas import tpu as pltpu

# feature-segment boundaries (match the PyTorch module)
NO_SIZE, PT_SIZE, RPT_SIZE, TTD_SIZE = 3, 6, 11, 16
SEGMENTS = [(0, NO_SIZE), (NO_SIZE, PT_SIZE), (PT_SIZE, RPT_SIZE), (RPT_SIZE, TTD_SIZE)]
EPS = 1e-5

HIDDEN = [48, 36, 36, 24, 24, 12]

BT_MAX = 2048  # max batch-tile (lanes); review suggested sweeping 1024-4096


def _round_up(x, m):
    return (x + m - 1) // m * m


def _cdiv(a, b):
    return -(-a // b)


# ---------------------------------------------------------------------------
# Kernel: one batch tile (BT columns, batch on lanes) end-to-end.
# ---------------------------------------------------------------------------
def _network_kernel(x_ref, a_ref, w0_ref, wstk_ref, b_ref, out_ref):
    """x_ref: (BT, F) natural layout; a_ref: (F, F) segment-averaging matrix;
    w0_ref: (D, F); wstk_ref: (L-1, D, D); b_ref: (D, 8); out_ref: (OUT_PAD, BT)."""
    # in-kernel transpose (XLU, otherwise idle here) -> batch on the 128-lane
    # axis so every matmul has a full-lane N and the output store is lane-dense.
    x = jnp.transpose(x_ref[...])                    # (F, BT) f32
    feat = x.shape[0]

    # --- instance norm on the 4 leading segments, via the MXU -----------------
    # a is a static segment-averaging matrix: rows/cols >= 16 are zero.
    # HIGHEST keeps the stats f32-exact; the matrices are only FxF so this is cheap.
    a = a_ref[...]
    mean = jnp.dot(a, x, precision=lax.Precision.HIGHEST,
                   preferred_element_type=jnp.float32)       # rows>=16 -> 0
    cent = x - mean                                          # rows>=16 -> x
    var = jnp.dot(a, cent * cent, precision=lax.Precision.HIGHEST,
                  preferred_element_type=jnp.float32)        # biased variance
    row = lax.broadcasted_iota(jnp.int32, (feat, 1), 0)
    # eps for normalized rows, 1.0 for pass-through rows => rsqrt(1.0) == 1.
    off = jnp.where(row < TTD_SIZE, jnp.float32(EPS), jnp.float32(1.0))
    h = cent * lax.rsqrt(var + off)                          # (F, BT)

    # --- MLP: Linear/Tanh x6 then final Linear --------------------------------
    # DEFAULT matmul precision: single-pass bf16 on the MXU, f32 accumulation.
    biases = b_ref[...]                                      # (D, 8)

    # layer 0: (D, F) @ (F, BT)
    h = jnp.dot(w0_ref[...], h,
                preferred_element_type=jnp.float32) + biases[:, 0:1]
    h = jnp.tanh(h)

    # layers 1..6, zero-padded to a uniform (D, D); padding rows stay exactly 0
    # through tanh(0) == 0, so the math is exact.
    n_rest = wstk_ref.shape[0]
    for i in range(n_rest):
        h = jnp.dot(wstk_ref[i], h,
                    preferred_element_type=jnp.float32) + biases[:, i + 1:i + 2]
        if i < n_rest - 1:
            h = jnp.tanh(h)

    out_ref[...] = h[: out_ref.shape[0], :].astype(out_ref.dtype)


# ---------------------------------------------------------------------------
# Parameter construction / packing
# ---------------------------------------------------------------------------
def make_params(key, input_size, output_size):
    """PyTorch-default-style init; weights stored as (in, out) like the reference."""
    sizes = [input_size] + HIDDEN + [output_size]
    params = []
    for i in range(len(sizes) - 1):
        key, kw, kb = jax.random.split(key, 3)
        fan_in = sizes[i]
        bound = 1.0 / (fan_in ** 0.5)
        w = jax.random.uniform(kw, (sizes[i], sizes[i + 1]), jnp.float32, -bound, bound)
        b = jax.random.uniform(kb, (sizes[i + 1],), jnp.float32, -bound, bound)
        params += [w, b]
    return params


def pack_params(params, input_size, output_size):
    """Pack the 14 small arrays into 3 VMEM-friendly slabs (weights as (out, in)).
    Padding rows/cols in both weights AND biases stay exactly zero."""
    sizes = [input_size] + HIDDEN + [output_size]
    n_layers = len(sizes) - 1
    d = _round_up(max(HIDDEN + [output_size]), 8)            # uniform padded width (48)

    w0 = jnp.zeros((d, input_size), jnp.float32)
    w0 = w0.at[: sizes[1], :].set(params[0].T)

    wstk = jnp.zeros((n_layers - 1, d, d), jnp.float32)
    for i in range(1, n_layers):
        w = params[2 * i].T                                  # (out, in)
        wstk = wstk.at[i - 1, : w.shape[0], : w.shape[1]].set(w)

    bpack = jnp.zeros((d, _round_up(n_layers, 8)), jnp.float32)
    for i in range(n_layers):
        b = params[2 * i + 1]
        bpack = bpack.at[: b.shape[0], i].set(b)

    return w0, wstk, bpack


def build_norm_matrix(input_size):
    """Static (F, F) segment-averaging matrix; rows/cols >= 16 are zero."""
    a = np.zeros((input_size, input_size), np.float32)
    for lo, hi in SEGMENTS:
        a[lo:hi, lo:hi] = 1.0 / (hi - lo)
    return jnp.asarray(a)


# ---------------------------------------------------------------------------
# Batch-tile selection (padding-aware, v7x-megacore-aware)
# ---------------------------------------------------------------------------
def _choose_batch_tiling(batch):
    if batch <= 128:
        return 128, 128
    # enough tiles to stay <= BT_MAX; round the tile count up to even so both
    # v7x TensorCores get equal work; size tiles to minimize zero padding.
    n_tiles = max(2, _cdiv(batch, BT_MAX))
    if n_tiles % 2:
        n_tiles += 1
    bt = min(BT_MAX, _round_up(_cdiv(batch, n_tiles), 128))
    return bt, _round_up(batch, bt)


# ---------------------------------------------------------------------------
# Forward wrapper
# ---------------------------------------------------------------------------
@functools.partial(jax.jit, static_argnames=("output_size",))
def network_multi_channel_forward(x, w0, wstk, bpack, norm_mat, *, output_size):
    """x: (B, 1, F) float32 -> (B, output_size) float32."""
    batch, _, feat = x.shape
    x2 = x[:, 0, :]                                           # (B, F): free squeeze, no transpose

    bt, b_pad = _choose_batch_tiling(batch)
    if b_pad != batch:
        x2 = jnp.pad(x2, ((0, b_pad - batch), (0, 0)))        # zero rows -> finite math

    out_pad = _round_up(output_size, 8)
    grid = (b_pad // bt,)

    layer_sizes = [feat] + HIDDEN + [output_size]
    flops = 2 * b_pad * (sum(a * b for a, b in zip(layer_sizes[:-1], layer_sizes[1:]))
                         + 2 * feat * feat)
    transcendentals = b_pad * (sum(HIDDEN) + feat)
    bytes_accessed = 4 * (b_pad * (feat + out_pad)
                          + int(w0.size) + int(wstk.size) + int(bpack.size)
                          + int(norm_mat.size))

    out = pl.pallas_call(
        _network_kernel,
        out_shape=jax.ShapeDtypeStruct((out_pad, b_pad), jnp.float32),
        grid_spec=pltpu.PrefetchScalarGridSpec(
            num_scalar_prefetch=0,
            grid=grid,
            in_specs=[
                pl.BlockSpec((bt, feat), lambda i: (i, 0)),          # x batch tile
                pl.BlockSpec(norm_mat.shape, lambda i: (0, 0)),      # resident
                pl.BlockSpec(w0.shape, lambda i: (0, 0)),            # resident
                pl.BlockSpec(wstk.shape, lambda i: (0, 0, 0)),       # resident
                pl.BlockSpec(bpack.shape, lambda i: (0, 0)),         # resident
            ],
            out_specs=pl.BlockSpec((out_pad, bt), lambda i: (0, i)),  # lane-dense
        ),
        compiler_params=pltpu.CompilerParams(
            dimension_semantics=("parallel",)),                      # v7x: 2 TCs
        cost_estimate=pl.CostEstimate(flops=flops,
                                      transcendentals=transcendentals,
                                      bytes_accessed=bytes_accessed),
    )(x2, norm_mat, w0, wstk, bpack)

    return out[:output_size, :batch].T


# ---------------------------------------------------------------------------
# Pure-JAX reference mirroring the PyTorch forward
# ---------------------------------------------------------------------------
def _reference_forward(x, params):
    x2 = x[:, 0, :]
    pieces = []
    for lo, hi in SEGMENTS:
        seg = x2[:, lo:hi]
        mean = jnp.mean(seg, axis=-1, keepdims=True)
        var = jnp.mean((seg - mean) ** 2, axis=-1, keepdims=True)
        pieces.append((seg - mean) / jnp.sqrt(var + EPS))
    pieces.append(x2[:, TTD_SIZE:])
    h = jnp.concatenate(pieces, axis=1)
    n_layers = len(params) // 2
    for i in range(n_layers):
        h = jnp.dot(h, params[2 * i]) + params[2 * i + 1]
        if i < n_layers - 1:
            h = jnp.tanh(h)
    return h


if __name__ == "__main__":
    B = 2
    INPUT_SIZE = 20        # 16 normalized features + 4 "rest" features
    OUTPUT_SIZE = 4

    key = jax.random.PRNGKey(0)
    kx, kp = jax.random.split(key)
    x = jax.random.normal(kx, (B, 1, INPUT_SIZE), dtype=jnp.float32)
    params = make_params(kp, INPUT_SIZE, OUTPUT_SIZE)

    w0, wstk, bpack = pack_params(params, INPUT_SIZE, OUTPUT_SIZE)
    norm_mat = build_norm_matrix(INPUT_SIZE)

    out = network_multi_channel_forward(x, w0, wstk, bpack, norm_mat,
                                        output_size=OUTPUT_SIZE)
    out = jax.block_until_ready(out)

    ref = _reference_forward(x, params)
    assert out.shape == (B, OUTPUT_SIZE)
    # Kernel MLP runs single-pass bf16 on the MXU (DEFAULT precision) while the
    # tiny reference dots may be kept at full f32 by XLA; 5e-3 bounds the
    # worst-case bf16 input-rounding error while still catching real bugs.
    assert jnp.allclose(out, ref, atol=5e-3, rtol=5e-3)

    print("KERNEL_OK")
</pallas_src>

<mosaic_0001>
module attributes {stable_mosaic.version = 11 : i64} {
  func.func @_network_kernel(%arg0: i32, %arg1: memref<128x20xf32, #tpu.memory_space<vmem>>, %arg2: memref<20x20xf32, #tpu.memory_space<vmem>>, %arg3: memref<48x20xf32, #tpu.memory_space<vmem>>, %arg4: memref<6x48x48xf32, #tpu.memory_space<vmem>>, %arg5: memref<48x8xf32, #tpu.memory_space<vmem>>, %arg6: memref<8x128xf32, #tpu.memory_space<vmem>>) attributes {dimension_semantics = [#tpu.dimension_semantics<parallel>], iteration_bounds = array<i64: 1>, scalar_prefetch = 0 : i64, scratch_operands = 0 : i64, tpu.core_type = #tpu.core_type<tc>, window_params = [{transform_indices = @transform_0, window_bounds = array<i64: 128, 20>}, {pipeline_mode = #tpu.pipeline_mode<synchronous>, transform_indices = @transform_1, window_bounds = array<i64: 20, 20>}, {pipeline_mode = #tpu.pipeline_mode<synchronous>, transform_indices = @transform_2, window_bounds = array<i64: 48, 20>}, {pipeline_mode = #tpu.pipeline_mode<synchronous>, transform_indices = @transform_3, window_bounds = array<i64: 6, 48, 48>}, {pipeline_mode = #tpu.pipeline_mode<synchronous>, transform_indices = @transform_4, window_bounds = array<i64: 48, 8>}, {transform_indices = @transform_5, window_bounds = array<i64: 8, 128>}]} {
    %c0 = arith.constant 0 : index
    %c0_0 = arith.constant 0 : index
    %0 = vector.load %arg1[%c0, %c0_0] : memref<128x20xf32, #tpu.memory_space<vmem>>, vector<128x20xf32>
    %1 = tpu.transpose %0, [1, 0] : vector<128x20xf32> -> vector<20x128xf32>
    %c0_1 = arith.constant 0 : index
    %c0_2 = arith.constant 0 : index
    %2 = vector.load %arg2[%c0_1, %c0_2] : memref<20x20xf32, #tpu.memory_space<vmem>>, vector<20x20xf32>
    %cst = arith.constant dense<0.000000e+00> : vector<20x128xf32>
    %3 = tpu.matmul %2, %1, %cst {dimension_numbers = #tpu.dot_dimension_numbers<[1], [0], [0], [1], [0, 0, 1, 1], [], []>, precision = #tpu.contract_precision<fp32>} : vector<20x20xf32>, vector<20x128xf32>, vector<20x128xf32> -> vector<20x128xf32>
    %4 = arith.subf %1, %3 : vector<20x128xf32>
    %5 = arith.mulf %4, %4 : vector<20x128xf32>
    %cst_3 = arith.constant dense<0.000000e+00> : vector<20x128xf32>
    %6 = tpu.matmul %2, %5, %cst_3 {dimension_numbers = #tpu.dot_dimension_numbers<[1], [0], [0], [1], [0, 0, 1, 1], [], []>, precision = #tpu.contract_precision<fp32>} : vector<20x20xf32>, vector<20x128xf32>, vector<20x128xf32> -> vector<20x128xf32>
    %7 = tpu.iota {dimensions = array<i32: 0>} : vector<20x1xi32>
    %c16_i32 = arith.constant 16 : i32
    %8 = vector.broadcast %c16_i32 : i32 to vector<20x1xi32>
    %9 = arith.cmpi slt, %7, %8 : vector<20x1xi32>
    %cst_4 = arith.constant 9.99999974E-6 : f32
    %cst_5 = arith.constant 1.000000e+00 : f32
    %10 = vector.broadcast %cst_4 : f32 to vector<20x1xf32>
    %11 = vector.broadcast %cst_5 : f32 to vector<20x1xf32>
    %12 = arith.select %9, %10, %11 : vector<20x1xi1>, vector<20x1xf32>
    %13 = vector.broadcast %12 : vector<20x1xf32> to vector<20x128xf32>
    %14 = arith.addf %6, %13 : vector<20x128xf32>
    %15 = math.rsqrt %14 : vector<20x128xf32>
    %16 = arith.mulf %4, %15 : vector<20x128xf32>
    %c0_6 = arith.constant 0 : index
    %c0_7 = arith.constant 0 : index
    %17 = vector.load %arg5[%c0_6, %c0_7] : memref<48x8xf32, #tpu.memory_space<vmem>>, vector<48x8xf32>
    %c0_8 = arith.constant 0 : index
    %c0_9 = arith.constant 0 : index
    %18 = vector.load %arg3[%c0_8, %c0_9] : memref<48x20xf32, #tpu.memory_space<vmem>>, vector<48x20xf32>
    %cst_10 = arith.constant dense<0.000000e+00> : vector<48x128xf32>
    %19 = tpu.matmul %18, %16, %cst_10 {dimension_numbers = #tpu.dot_dimension_numbers<[1], [0], [0], [1], [0, 0, 1, 1], [], []>} : vector<48x20xf32>, vector<20x128xf32>, vector<48x128xf32> -> vector<48x128xf32>
    %20 = vector.extract_strided_slice %17 {offsets = [0, 0], sizes = [48, 1], strides = [1, 1]} : vector<48x8xf32> to vector<48x1xf32>
    %21 = vector.broadcast %20 : vector<48x1xf32> to vector<48x128xf32>
    %22 = arith.addf %19, %21 : vector<48x128xf32>
    %23 = math.tanh %22 : vector<48x128xf32>
    %c0_11 = arith.constant 0 : index
    %c0_12 = arith.constant 0 : index
    %c0_13 = arith.constant 0 : index
    %24 = vector.load %arg4[%c0_11, %c0_12, %c0_13] : memref<6x48x48xf32, #tpu.memory_space<vmem>>, vector<1x48x48xf32>
    %25 = vector.shape_cast %24 : vector<1x48x48xf32> to vector<48x48xf32>
    %cst_14 = arith.constant dense<0.000000e+00> : vector<48x128xf32>
    %26 = tpu.matmul %25, %23, %cst_14 {dimension_numbers = #tpu.dot_dimension_numbers<[1], [0], [0], [1], [0, 0, 1, 1], [], []>} : vector<48x48xf32>, vector<48x128xf32>, vector<48x128xf32> -> vector<48x128xf32>
    %27 = vector.extract_strided_slice %17 {offsets = [0, 1], sizes = [48, 1], strides = [1, 1]} : vector<48x8xf32> to vector<48x1xf32>
    %28 = vector.broadcast %27 : vector<48x1xf32> to vector<48x128xf32>
    %29 = arith.addf %26, %28 : vector<48x128xf32>
    %30 = math.tanh %29 : vector<48x128xf32>
    %c1 = arith.constant 1 : index
    %c0_15 = arith.constant 0 : index
    %c0_16 = arith.constant 0 : index
    %31 = vector.load %arg4[%c1, %c0_15, %c0_16] : memref<6x48x48xf32, #tpu.memory_space<vmem>>, vector<1x48x48xf32>
    %32 = vector.shape_cast %31 : vector<1x48x48xf32> to vector<48x48xf32>
    %cst_17 = arith.constant dense<0.000000e+00> : vector<48x128xf32>
    %33 = tpu.matmul %32, %30, %cst_17 {dimension_numbers = #tpu.dot_dimension_numbers<[1], [0], [0], [1], [0, 0, 1, 1], [], []>} : vector<48x48xf32>, vector<48x128xf32>, vector<48x128xf32> -> vector<48x128xf32>
    %34 = vector.extract_strided_slice %17 {offsets = [0, 2], sizes = [48, 1], strides = [1, 1]} : vector<48x8xf32> to vector<48x1xf32>
    %35 = vector.broadcast %34 : vector<48x1xf32> to vector<48x128xf32>
    %36 = arith.addf %33, %35 : vector<48x128xf32>
    %37 = math.tanh %36 : vector<48x128xf32>
    %c2 = arith.constant 2 : index
    %c0_18 = arith.constant 0 : index
    %c0_19 = arith.constant 0 : index
    %38 = vector.load %arg4[%c2, %c0_18, %c0_19] : memref<6x48x48xf32, #tpu.memory_space<vmem>>, vector<1x48x48xf32>
    %39 = vector.shape_cast %38 : vector<1x48x48xf32> to vector<48x48xf32>
    %cst_20 = arith.constant dense<0.000000e+00> : vector<48x128xf32>
    %40 = tpu.matmul %39, %37, %cst_20 {dimension_numbers = #tpu.dot_dimension_numbers<[1], [0], [0], [1], [0, 0, 1, 1], [], []>} : vector<48x48xf32>, vector<48x128xf32>, vector<48x128xf32> -> vector<48x128xf32>
    %41 = vector.extract_strided_slice %17 {offsets = [0, 3], sizes = [48, 1], strides = [1, 1]} : vector<48x8xf32> to vector<48x1xf32>
    %42 = vector.broadcast %41 : vector<48x1xf32> to vector<48x128xf32>
    %43 = arith.addf %40, %42 : vector<48x128xf32>
    %44 = math.tanh %43 : vector<48x128xf32>
    %c3 = arith.constant 3 : index
    %c0_21 = arith.constant 0 : index
    %c0_22 = arith.constant 0 : index
    %45 = vector.load %arg4[%c3, %c0_21, %c0_22] : memref<6x48x48xf32, #tpu.memory_space<vmem>>, vector<1x48x48xf32>
    %46 = vector.shape_cast %45 : vector<1x48x48xf32> to vector<48x48xf32>
    %cst_23 = arith.constant dense<0.000000e+00> : vector<48x128xf32>
    %47 = tpu.matmul %46, %44, %cst_23 {dimension_numbers = #tpu.dot_dimension_numbers<[1], [0], [0], [1], [0, 0, 1, 1], [], []>} : vector<48x48xf32>, vector<48x128xf32>, vector<48x128xf32> -> vector<48x128xf32>
    %48 = vector.extract_strided_slice %17 {offsets = [0, 4], sizes = [48, 1], strides = [1, 1]} : vector<48x8xf32> to vector<48x1xf32>
    %49 = vector.broadcast %48 : vector<48x1xf32> to vector<48x128xf32>
    %50 = arith.addf %47, %49 : vector<48x128xf32>
    %51 = math.tanh %50 : vector<48x128xf32>
    %c4 = arith.constant 4 : index
    %c0_24 = arith.constant 0 : index
    %c0_25 = arith.constant 0 : index
    %52 = vector.load %arg4[%c4, %c0_24, %c0_25] : memref<6x48x48xf32, #tpu.memory_space<vmem>>, vector<1x48x48xf32>
    %53 = vector.shape_cast %52 : vector<1x48x48xf32> to vector<48x48xf32>
    %cst_26 = arith.constant dense<0.000000e+00> : vector<48x128xf32>
    %54 = tpu.matmul %53, %51, %cst_26 {dimension_numbers = #tpu.dot_dimension_numbers<[1], [0], [0], [1], [0, 0, 1, 1], [], []>} : vector<48x48xf32>, vector<48x128xf32>, vector<48x128xf32> -> vector<48x128xf32>
    %55 = vector.extract_strided_slice %17 {offsets = [0, 5], sizes = [48, 1], strides = [1, 1]} : vector<48x8xf32> to vector<48x1xf32>
    %56 = vector.broadcast %55 : vector<48x1xf32> to vector<48x128xf32>
    %57 = arith.addf %54, %56 : vector<48x128xf32>
    %58 = math.tanh %57 : vector<48x128xf32>
    %c5 = arith.constant 5 : index
    %c0_27 = arith.constant 0 : index
    %c0_28 = arith.constant 0 : index
    %59 = vector.load %arg4[%c5, %c0_27, %c0_28] : memref<6x48x48xf32, #tpu.memory_space<vmem>>, vector<1x48x48xf32>
    %60 = vector.shape_cast %59 : vector<1x48x48xf32> to vector<48x48xf32>
    %cst_29 = arith.constant dense<0.000000e+00> : vector<48x128xf32>
    %61 = tpu.matmul %60, %58, %cst_29 {dimension_numbers = #tpu.dot_dimension_numbers<[1], [0], [0], [1], [0, 0, 1, 1], [], []>} : vector<48x48xf32>, vector<48x128xf32>, vector<48x128xf32> -> vector<48x128xf32>
    %62 = vector.extract_strided_slice %17 {offsets = [0, 6], sizes = [48, 1], strides = [1, 1]} : vector<48x8xf32> to vector<48x1xf32>
    %63 = vector.broadcast %62 : vector<48x1xf32> to vector<48x128xf32>
    %64 = arith.addf %61, %63 : vector<48x128xf32>
    %65 = vector.extract_strided_slice %64 {offsets = [0, 0], sizes = [8, 128], strides = [1, 1]} : vector<48x128xf32> to vector<8x128xf32>
    %c0_30 = arith.constant 0 : index
    %c0_31 = arith.constant 0 : index
    %66 = vector.load %arg6[%c0_30, %c0_31] : memref<8x128xf32, #tpu.memory_space<vmem>>, vector<8x128xf32>
    tpu.vector_store %arg6[%c0_30, %c0_31], %65 {strides = array<i32>} : memref<8x128xf32, #tpu.memory_space<vmem>>, vector<8x128xf32>,
    return
  }
  func.func @transform_0(%arg0: i32) -> (i32, i32) {
    %c0_i32 = arith.constant 0 : i32
    %c0_i32_0 = arith.constant 0 : i32
    return %arg0, %c0_i32 : i32, i32
  }
  func.func @transform_1(%arg0: i32) -> (i32, i32) {
    %c0_i32 = arith.constant 0 : i32
    %c0_i32_0 = arith.constant 0 : i32
    %c0_i32_1 = arith.constant 0 : i32
    return %c0_i32, %c0_i32_0 : i32, i32
  }
  func.func @transform_2(%arg0: i32) -> (i32, i32) {
    %c0_i32 = arith.constant 0 : i32
    %c0_i32_0 = arith.constant 0 : i32
    %c0_i32_1 = arith.constant 0 : i32
    return %c0_i32, %c0_i32_0 : i32, i32
  }
  func.func @transform_3(%arg0: i32) -> (i32, i32, i32) {
    %c0_i32 = arith.constant 0 : i32
    %c0_i32_0 = arith.constant 0 : i32
    %c0_i32_1 = arith.constant 0 : i32
    %c0_i32_2 = arith.constant 0 : i32
    return %c0_i32, %c0_i32_0, %c0_i32_1 : i32, i32, i32
  }
  func.func @transform_4(%arg0: i32) -> (i32, i32) {
    %c0_i32 = arith.constant 0 : i32
    %c0_i32_0 = arith.constant 0 : i32
    %c0_i32_1 = arith.constant 0 : i32
    return %c0_i32, %c0_i32_0 : i32, i32
  }
  func.func @transform_5(%arg0: i32) -> (i32, i32) {
    %c0_i32 = arith.constant 0 : i32
    %c0_i32_0 = arith.constant 0 : i32
    return %c0_i32, %arg0 : i32, i32
  }
}

</mosaic_0001>

<bundles_post_ra>
// kernel: network_multi_channel_forward.1
= control target key start
LH: loop header
LB: loop body
LE: loop exit
PB: predicated region body
PF: predicated region fallthrough
CT: control target
= control target key end

     0   :  { %10 = vsyncpa [#allocation3], 0  ;;  %s1433_s21 = smov [#allocation2]   ;;  %s1434_s23 = smov 128   ;;  %s1770_s0 = inlined_call_operand.vmem [shape: f32[128,20], index: 0, kind: input, shape index: {}]   ;;  %s1771_s1 = inlined_call_operand.vmem [shape: f32[20,20], index: 1, kind: input, shape index: {}]   ;;  %s1772_s2 = inlined_call_operand.vmem [shape: f32[48,20], index: 2, kind: input, shape index: {}]   ;;  %s1773_s3 = inlined_call_operand.hbm [shape: f32[6,48,48], index: 3, kind: input, shape index: {}]   ;;  %s1774_s4 = inlined_call_operand.vmem [shape: f32[48,8], index: 4, kind: input, shape index: {}]   ;;  %s1775_s5 = inlined_call_operand.vmem [shape: f32[8,128], index: 5, kind: output, shape index: {}]  }
   0x1   :  { %s21_s20 = sshll.u32 %s1773_s3, 4  ;;  %s23_s22 = sshll.u32 %s1433_s21, 4  ;;  %s22_s20 = int_to_ptr.hbm [resolvable:$true] %s21_s20  ;;  %s24_s22 = int_to_ptr.vmem [resolvable:$true] %s23_s22 }
   0x2   :  { %s1435_s24 = smov 8  }
   0x3   :  { %29 = dma.hbm_to_vmem [thread:$0]  %s22_s20, 4608, %s24_s22, [#allocation3], %s1434_s23, %s1434_s23, %s1435_s24  }
   0x4   :  { %1431 = dma.done.wait [#allocation3], 4608  }
   0x5   :  { %1432 = vsyncadd [#allocation3], 4294962688  ;;  %v36_v0 = vld [vmem:[%s1770_s0] sm:$0xff]  ;;  %v37_v1 = vld [vmem:[%s1770_s0 + $0x8] sm:$0xff]  ;;  %vm87_vm0 = vcmask 162816   ;;  %vm97_vm1 = vcmask 1043456  }
   0x6   :  { %52 = vxpose.xlu0.b32.start [1/16] (narrow) %v36_v0, 24  ;;  %v38_v2 = vld [vmem:[%s1770_s0 + $0x10] sm:$0xff]  ;;  %v39_v3 = vld [vmem:[%s1770_s0 + $0x18] sm:$0xff]  ;;  %v40_v4 = vld [vmem:[%s1770_s0 + $0x20] sm:$0xff]  ;;  %vm755_vm11 = vcmask 392192  }
   0x7   :  { %v41_v5 = vld [vmem:[%s1770_s0 + $0x28] sm:$0xff]  ;;  %v42_v6 = vld [vmem:[%s1770_s0 + $0x30] sm:$0xff]  ;;  %v43_v7 = vld [vmem:[%s1770_s0 + $0x38] sm:$0xff] }
   0x8   :  { %v44_v8 = vld [vmem:[%s1770_s0 + $0x40] sm:$0xff]  ;;  %v45_v9 = vld [vmem:[%s1770_s0 + $0x48] sm:$0xff]  ;;  %v46_v10 = vld [vmem:[%s1770_s0 + $0x50] sm:$0xff] }
   0x9   :  { %v47_v11 = vld [vmem:[%s1770_s0 + $0x58] sm:$0xff]  ;;  %v48_v12 = vld [vmem:[%s1770_s0 + $0x60] sm:$0xff]  ;;  %v49_v13 = vld [vmem:[%s1770_s0 + $0x68] sm:$0xff] }
   0xa   :  { %v50_v14 = vld [vmem:[%s1770_s0 + $0x70] sm:$0xff]  ;;  %v51_v15 = vld [vmem:[%s1770_s0 + $0x78] sm:$0xff]  ;;  %v84_v16 = vld [vmem:[%s1771_s1] sm:$0xff] }
   0xb   :  { %v89_v18 = vsel %vm87_vm0, %v84_v16, 0  ;;  %v85_v21 = vld [vmem:[%s1771_s1 + $0x8] sm:$0xff]  ;;  %v86_v30 = vld [vmem:[%s1771_s1 + $0x10] sm:$0xf] }
   0xc   :  { %v1530_v19 = vand.u32 4294901760, %v89_v18  ;;  %v92_v23 = vsel %vm87_vm0, %v85_v21, 0  ;;  %v95_v36 = vsel %vm87_vm0, %v86_v30, 0 }
   0xd   :  { %v1546_v27 = vand.u32 4294901760, %v92_v23  ;;  %v1568_v43 = vand.u32 4294901760, %v95_v36 }
   0xe   :  { %53 = vxpose.xlu0.b32.cont [2/16] (narrow) %v37_v1, 24  ;;  %v1538_v22 = vsub.f32 %v89_v18, %v1530_v19 }
   0xf   :  { %v1560_v35 = vsub.f32 %v92_v23, %v1546_v27  ;;  %v1574_v49 = vsub.f32 %v95_v36, %v1568_v43 }
  0x10   :  { %v1543_v25 = vand.u32 4294901760, %v1538_v22 }
  0x11   :  { %v1566_v42 = vand.u32 4294901760, %v1560_v35  ;;  %v1580_v53 = vand.u32 4294901760, %v1574_v49 }
  0x12   :  { %v123_v32 = vsub.f32 %v1538_v22, %v1543_v25 }
  0x13   :  { %v131_v48 = vsub.f32 %v1560_v35, %v1566_v42  ;;  %v139_v54 = vsub.f32 %v1574_v49, %v1580_v53 }
  0x14   :  { %v1563_v39 = vand.u32 4294901760, %v123_v32 }
  0x15   :  { %v1577_v52 = vand.u32 4294901760, %v131_v48  ;;  %v1587_v55 = vand.u32 4294901760, %v139_v54 }
  0x16   :  { %54 = vxpose.xlu0.b32.cont [3/16] (narrow) %v38_v2, 24 }
  0x1e   :  { %55 = vxpose.xlu0.b32.cont [4/16] (narrow) %v39_v3, 24 }
  0x26   :  { %56 = vxpose.xlu0.b32.cont [5/16] (narrow) %v40_v4, 24 }
  0x2e   :  { %57 = vxpose.xlu0.b32.cont [6/16] (narrow) %v41_v5, 24 }
  0x36   :  { %58 = vxpose.xlu0.b32.cont [7/16] (narrow) %v42_v6, 24 }
  0x3e   :  { %59 = vxpose.xlu0.b32.cont [8/16] (narrow) %v43_v7, 24 }
  0x46   :  { %60 = vxpose.xlu0.b32.cont [9/16] (narrow) %v44_v8, 24 }
  0x4e   :  { %61 = vxpose.xlu0.b32.cont [10/16] (narrow) %v45_v9, 24 }
  0x56   :  { %62 = vxpose.xlu0.b32.cont [11/16] (narrow) %v46_v10, 24 }
  0x5e   :  { %63 = vxpose.xlu0.b32.cont [12/16] (narrow) %v47_v11, 24 }
  0x66   :  { %64 = vxpose.xlu0.b32.cont [13/16] (narrow) %v48_v12, 24 }
  0x6e   :  { %65 = vxpose.xlu0.b32.cont [14/16] (narrow) %v49_v13, 24 }
  0x76   :  { %66 = vxpose.xlu0.b32.cont [15/16] (narrow) %v50_v14, 24 }
  0x7e   :  { %67 = vxpose.xlu0.b32.end [16/16] (narrow) %v51_v15, 24 }
  0xaa   :  { %v1527_v17 = vpop.trf.xlu0 }
  0xab   :  { %v118_v26 = vand.u32 4294901760, %v1527_v17 }
  0xad   :  { %v171_v33 = vsub.f32 %v1527_v17, %v118_v26 }
  0xaf   :  { %v172_v41 = vand.u32 4294901760, %v171_v33 }
  0xb1   :  { %v173_v47 = vsub.f32 %v171_v33, %v172_v41 }
  0xb2   :  { %v1532_v20 = vpop.trf.xlu0 }
  0xb3   :  { %v116_v24 = vand.u32 4294901760, %v1532_v20  ;;  %v174_v51 = vand.u32 4294901760, %v173_v47 }
  0xb5   :  { %v165_v28 = vsub.f32 %v1532_v20, %v116_v24 }
  0xb7   :  { %v166_v38 = vand.u32 4294901760, %v165_v28 }
  0xb9   :  { %v167_v45 = vsub.f32 %v165_v28, %v166_v38 }
  0xba   :  { %v1549_v29 = vpop.trf.xlu0 }
  0xbb   :  { %v99_v31 = vsel %vm97_vm1, %v1549_v29, 0  ;;  %v168_v50 = vand.u32 4294901760, %v167_v45 }
  0xbc   :  { %v114_v34 = vand.u32 4294901760, %v99_v31 }
  0xbe   :  { %v159_v37 = vsub.f32 %v99_v31, %v114_v34  ;;  %115 = vmatpush.msra.mxu3 %v114_v34 }
  0xc0   :  { %117 = vmatpush.msra.mxu3 %v116_v24  ;;  %204 = vmatpush.msra.mxu2 %v159_v37  ;;  %v160_v40 = vand.u32 4294901760, %v159_v37 }
  0xc2   :  { %119 = vmatpush.msra.mxu3 %v118_v26  ;;  %207 = vmatpush.msra.mxu2 %v165_v28  ;;  %v161_v44 = vsub.f32 %v159_v37, %v160_v40 }
  0xc3   :  { %125 = vmatmul.f32.vlgmr.msra.gmra.mxu3 %v1563_v39 }
  0xc4   :  { %1301 = vmatpush.msrb.mxu3 %v159_v37  ;;  %210 = vmatpush.msra.mxu2 %v171_v33  ;;  %v162_v46 = vand.u32 4294901760, %v161_v44 }
  0xc5   :  { %213 = vmatmul.f32.vlgmr.msra.gmra.mxu2 %v1538_v22 }
  0xc6   :  { %1302 = vmatpush.msrb.mxu3 %v165_v28  ;;  %163 = vmatpush.msra.mxu0 %v162_v46 }
  0xc7   :  { %1298 = vmatpush.msra.mxu1 %v162_v46 }
  0xc8   :  { %1303 = vmatpush.msrb.mxu3 %v171_v33  ;;  %169 = vmatpush.msra.mxu0 %v168_v50 }
  0xc9   :  { %1299 = vmatpush.msra.mxu1 %v168_v50 }
  0xca   :  { %241 = vmatpush.msra.mxu3 %v114_v34  ;;  %175 = vmatpush.msra.mxu0 %v174_v51 }
  0xcb   :  { %1300 = vmatpush.msra.mxu1 %v174_v51  ;;  %133 = vmatmul.f32.gmra.mxu3 %v1577_v52 }
  0xcc   :  { %243 = vmatpush.msra.mxu3 %v116_v24  ;;  %177 = vmatmul.f32.vlgmr.msra.gmra.mxu0 %v1530_v19 }
  0xcd   :  { %281 = vmatpush.msrb.mxu0 %v160_v40  ;;  %317 = vmatpush.msrb.mxu1 %v114_v34 }
  0xce   :  { %245 = vmatpush.msra.mxu3 %v118_v26  ;;  %185 = vmatmul.f32.vlgmr.msra.gmra.mxu1 %v1568_v43 }
  0xcf   :  { %285 = vmatpush.msrb.mxu0 %v166_v38  ;;  %319 = vmatpush.msrb.mxu1 %v116_v24 }
  0xd1   :  { %289 = vmatpush.msrb.mxu0 %v172_v41  ;;  %321 = vmatpush.msrb.mxu1 %v118_v26 }
  0xd3   :  { %141 = vmatmul.f32.gmra.mxu3 %v1587_v55 }
  0xd4   :  { %181 = vmatmul.f32.gmra.mxu0 %v1546_v27 }
  0xd6   :  { %323 = vmatmul.f32.vlgmr.msrb.gmra.mxu1 %v1530_v19 }
  0xdb   :  { %218 = vmatmul.f32.vlgmr.msrb.gmra.mxu3 %v1560_v35 }
  0xdc   :  { %291 = vmatmul.f32.vlgmr.msrb.gmra.mxu0 %v1530_v19 }
  0xde   :  { %327 = vmatmul.f32.gmra.mxu1 %v1546_v27 }
  0xe3   :  { %223 = vmatmul.f32.gmra.mxu3 %v1574_v49 }
  0xe4   :  { %295 = vmatmul.f32.gmra.mxu0 %v1546_v27 }
  0xe6   :  { %331 = vmatmul.f32.gmra.mxu1 %v1568_v43 }
  0xeb   :  { %249 = vmatmul.f32.vlgmr.msra.gmra.mxu3 %v1543_v25 }
  0xec   :  { %299 = vmatmul.f32.gmra.mxu0 %v1568_v43 }
  0xf3   :  { %255 = vmatmul.f32.gmra.mxu3 %v1566_v42 }
  0xfb   :  { %261 = vmatmul.f32.gmra.mxu3 %v1580_v53 }
 0x146   :  { %v126_v56 = vpop.f32.mrf.mxu3 }
 0x148   :  { %v214_v3 = vpop.f32.mrf.mxu2 }
 0x149   :  { %v178_v59 = vpop.f32.mrf.mxu0 }
 0x14a   :  { %v179_v1 = vadd.f32 %v178_v59, %v126_v56 }
 0x14b   :  { %v186_v62 = vpop.f32.mrf.mxu1 }
 0x14c   :  { %v215_v5 = vadd.f32 %v214_v3, %v179_v1 }
 0x14e   :  { %v134_v57 = vpop.f32.mrf.mxu3 }
 0x151   :  { %v182_v61 = vpop.f32.mrf.mxu0 }
 0x152   :  { %v183_v7 = vadd.f32 %v182_v61, %v134_v57 }
 0x153   :  { %v324_v2 = vpop.f32.mrf.mxu1 }
 0x156   :  { %v142_v58 = vpop.f32.mrf.mxu3 }
 0x157   :  { %v187_v16 = vadd.f32 %v186_v62, %v142_v58 }
 0x159   :  { %v292_v0 = vpop.f32.mrf.mxu0 }
 0x15b   :  { %v328_v12 = vpop.f32.mrf.mxu1 }
 0x15e   :  { %v219_v60 = vpop.f32.mrf.mxu3 }
 0x15f   :  { %v220_v9 = vadd.f32 %v219_v60, %v183_v7 }
 0x161   :  { %v296_v8 = vpop.f32.mrf.mxu0 }
 0x163   :  { %v332_v32 = vpop.f32.mrf.mxu1 }
 0x166   :  { %v224_v63 = vpop.f32.mrf.mxu3 }
 0x167   :  { %v225_v21 = vadd.f32 %v224_v63, %v187_v16 }
 0x169   :  { %v300_v28 = vpop.f32.mrf.mxu0 }
 0x16e   :  { %v250_v4 = vpop.f32.mrf.mxu3 }
 0x16f   :  { %v251_v6 = vadd.f32 %v250_v4, %v215_v5 }
 0x171   :  { %v293_v10 = vadd.f32 %v292_v0, %v251_v6 }
 0x173   :  { %v325_v15 = vadd.f32 %v324_v2, %v293_v10 }
 0x175   :  { %v1606_v24 = vsub.f32 %v1527_v17, %v325_v15  ;;  %v1639_v15 = vld [vmem:[%s1774_s4 + $0x28] sm:$0xff] }
 0x176   :  { %v256_v11 = vpop.f32.mrf.mxu3 }
 0x177   :  { %v257_v13 = vadd.f32 %v256_v11, %v220_v9  ;;  %v338_v34 = vmul.f32 %v1606_v24, %v1606_v24 }
 0x179   :  { %v297_v14 = vadd.f32 %v296_v8, %v257_v13 }
 0x17b   :  { %v329_v18 = vadd.f32 %v328_v12, %v297_v14 }
 0x17d   :  { %v1603_v23 = vsub.f32 %v1532_v20, %v329_v18  ;;  %v371_v20 = vand.u32 4294901760, %v338_v34  ;;  %v1436_v18 = vmov 0  }
 0x17e   :  { %v262_v26 = vpop.f32.mrf.mxu3  ;;  %1314 = vset.pattern.permute.xlu1 %v1436_v18  ;;  %1315 = vset.pattern.permute.xlu2 %v1436_v18  ;;  %v725_v18 = vld [vmem:[#allocation2] sm:$0xff] }
 0x17f   :  { %v263_v30 = vadd.f32 %v262_v26, %v225_v21  ;;  %v339_v31 = vmul.f32 %v1603_v23, %v1603_v23  ;;  %v424_v45 = vsub.f32 %v338_v34, %v371_v20  ;;  %660 = vperm.xlu1 %1314, %v1639_v15  }
 0x181   :  { %v301_v33 = vadd.f32 %v300_v28, %v263_v30  ;;  %v369_v37 = vand.u32 4294901760, %v339_v31  ;;  %v425_v50 = vand.u32 4294901760, %v424_v45 }
 0x183   :  { %v333_v36 = vadd.f32 %v332_v32, %v301_v33  ;;  %v418_v40 = vsub.f32 %v339_v31, %v369_v37  ;;  %v426_v56 = vsub.f32 %v424_v45, %v425_v50 }
 0x185   :  { %v1613_v38 = vsub.f32 %v1549_v29, %v333_v36  ;;  %v419_v47 = vand.u32 4294901760, %v418_v40  ;;  %v427_v58 = vand.u32 4294901760, %v426_v56  ;;  %v1645_v36 = vld [vmem:[%s1774_s4 + $0x20] sm:$0xff] }
 0x187   :  { %v340_v17 = vmul.f32 %v1613_v38, %v1613_v38  ;;  %v420_v51 = vsub.f32 %v418_v40, %v419_v47  ;;  %655 = vperm.xlu1 %1314, %v1645_v36  }
 0x189   :  { %v352_v41 = vsel %vm97_vm1, %v340_v17, 0  ;;  %v421_v57 = vand.u32 4294901760, %v420_v51 }
 0x18a   :  { %v367_v44 = vand.u32 4294901760, %v352_v41 }
 0x18c   :  { %368 = vmatpush.msrb.mxu2 %v367_v44  ;;  %494 = vmatpush.msra.mxu1 %v367_v44  ;;  %v412_v46 = vsub.f32 %v352_v41, %v367_v44 }
 0x18e   :  { %370 = vmatpush.msrb.mxu2 %v369_v37  ;;  %457 = vmatpush.msra.mxu0 %v412_v46  ;;  %v413_v48 = vand.u32 4294901760, %v412_v46 }
 0x18f   :  { %496 = vmatpush.msra.mxu1 %v369_v37 }
 0x190   :  { %372 = vmatpush.msrb.mxu2 %v371_v20  ;;  %460 = vmatpush.msra.mxu0 %v418_v40  ;;  %v414_v29 = vsub.f32 %v412_v46, %v413_v48  ;;  %v1651_v46 = vld [vmem:[%s1774_s4 + $0x18] sm:$0xff] }
 0x191   :  { %498 = vmatpush.msra.mxu1 %v371_v20  ;;  %378 = vmatmul.f32.vlgmr.msrb.gmra.mxu2 %v1563_v39 }
 0x192   :  { %534 = vmatpush.msra.mxu2 %v413_v48  ;;  %463 = vmatpush.msra.mxu0 %v424_v45  ;;  %v415_v54 = vand.u32 4294901760, %v414_v29 }
 0x193   :  { %466 = vmatmul.f32.vlgmr.msra.gmra.mxu0 %v1538_v22  ;;  %502 = vmatmul.f32.vlgmr.msra.gmra.mxu1 %v1543_v25 }
 0x194   :  { %538 = vmatpush.msra.mxu2 %v419_v47  ;;  %416 = vmatpush.msrb.mxu3 %v415_v54  ;;  %v1656_v47 = vld [vmem:[%s1774_s4 + $0x8] sm:$0xff] }
 0x195   :  { %650 = vperm.xlu2 %1315, %v1651_v46   ;;  %640 = vperm.xlu1 %1314, %v1656_v47  }
 0x196   :  { %542 = vmatpush.msra.mxu2 %v425_v50  ;;  %422 = vmatpush.msrb.mxu3 %v421_v57 }
 0x198   :  { %428 = vmatpush.msrb.mxu3 %v427_v58 }
 0x199   :  { %386 = vmatmul.f32.gmra.mxu2 %v1577_v52  ;;  %430 = vmatmul.f32.vlgmr.msrb.gmra.mxu3 %v1530_v19 }
 0x19a   :  { %570 = vmatpush.msra.mxu3 %v367_v44 }
 0x19b   :  { %471 = vmatmul.f32.gmra.mxu0 %v1560_v35  ;;  %508 = vmatmul.f32.gmra.mxu1 %v1566_v42 }
 0x19c   :  { %572 = vmatpush.msra.mxu3 %v369_v37 }
 0x19e   :  { %574 = vmatpush.msra.mxu3 %v371_v20 }
 0x1a1   :  { %394 = vmatmul.f32.gmra.mxu2 %v1587_v55  ;;  %434 = vmatmul.f32.gmra.mxu3 %v1546_v27 }
 0x1a3   :  { %476 = vmatmul.f32.gmra.mxu0 %v1574_v49  ;;  %514 = vmatmul.f32.gmra.mxu1 %v1580_v53 }
 0x1a9   :  { %438 = vmatmul.f32.gmra.mxu3 %v1568_v43  ;;  %544 = vmatmul.f32.vlgmr.msra.gmra.mxu2 %v1530_v19 }
 0x1b1   :  { %548 = vmatmul.f32.gmra.mxu2 %v1546_v27  ;;  %576 = vmatmul.f32.vlgmr.msra.gmra.mxu3 %v1530_v19 }
 0x1b9   :  { %552 = vmatmul.f32.gmra.mxu2 %v1568_v43  ;;  %580 = vmatmul.f32.gmra.mxu3 %v1546_v27 }
 0x1c1   :  { %584 = vmatmul.f32.gmra.mxu3 %v1568_v43 }
 0x210   :  { %v467_v49 = vpop.f32.mrf.mxu0  ;;  %v503_v53 = vpop.f32.mrf.mxu1 }
 0x214   :  { %v379_v22 = vpop.f32.mrf.mxu2 }
 0x215   :  { %v380_v52 = vadd.f32 1e-05, %v379_v22  ;;  %v1663_v22 = vld [vmem:[%s1774_s4 + $0x10] sm:$0xff] }
 0x216   :  { %645 = vperm.xlu2 %1315, %v1663_v22  }
 0x218   :  { %v472_v62 = vpop.f32.mrf.mxu0  ;;  %v509_v0 = vpop.f32.mrf.mxu1 }
 0x21c   :  { %v387_v25 = vpop.f32.mrf.mxu2  ;;  %v431_v35 = vpop.f32.mrf.mxu3 }
 0x21d   :  { %v388_v60 = vadd.f32 1e-05, %v387_v25  ;;  %v432_v61 = vadd.f32 %v431_v35, %v380_v52  ;;  %v630_v52 = vld [vmem:[%s1772_s2 + $0x18] sm:$0xff] }
 0x21f   :  { %v468_v19 = vadd.f32 %v467_v49, %v432_v61  ;;  %v627_v49 = vld [vmem:[%s1772_s2] sm:$0xff] }
 0x220   :  { %v477_v8 = vpop.f32.mrf.mxu0  ;;  %v515_v13 = vpop.f32.mrf.mxu1 }
 0x221   :  { %v504_v27 = vadd.f32 %v503_v53, %v468_v19  ;;  %v631_v53 = vld [vmem:[%s1772_s2 + $0x20] sm:$0xff] }
 0x224   :  { %v395_v39 = vpop.f32.mrf.mxu2  ;;  %v435_v42 = vpop.f32.mrf.mxu3 }
 0x225   :  { %v436_v63 = vadd.f32 %v435_v42, %v388_v60  ;;  %v396_v2 = vadd.f32 1.0, %v395_v39 }
 0x227   :  { %v473_v43 = vadd.f32 %v472_v62, %v436_v63  ;;  %v661_v62 = vpop.permute.xlu1 %660  ;;  %v651_v63 = vpop.permute.xlu2 %650 }
 0x229   :  { %v510_v5 = vadd.f32 %v509_v0, %v473_v43  ;;  %v1437_v0 = vmov 1  }
 0x22a   :  { %1316 = vset.pattern.permute.xlu1 %v1437_v0 }
 0x22b   :  { %752 = vperm.xlu1 %1316, %v1639_v15  }
 0x22c   :  { %v439_v55 = vpop.f32.mrf.mxu3  ;;  %v545_v59 = vpop.f32.mrf.mxu2 }
 0x22d   :  { %v546_v4 = vadd.f32 %v545_v59, %v504_v27  ;;  %v440_v6 = vadd.f32 %v439_v55, %v396_v2  ;;  %v632_v55 = vld [vmem:[%s1772_s2 + $0x28] sm:$0xff] }
 0x22f   :  { %v478_v11 = vadd.f32 %v477_v8, %v440_v6  ;;  %v656_v27 = vpop.permute.xlu1 %655 }
 0x231   :  { %v516_v16 = vadd.f32 %v515_v13, %v478_v11 }
 0x233   :  { %744 = vperm.xlu1 %1316, %v1651_v46  }
 0x234   :  { %v577_v1 = vpop.f32.mrf.mxu3  ;;  %v549_v3 = vpop.f32.mrf.mxu2 }
 0x235   :  { %v578_v7 = vadd.f32 %v577_v1, %v546_v4  ;;  %v550_v9 = vadd.f32 %v549_v3, %v510_v5 }
 0x237   :  { %1329 = vrsqrt.f32 %v578_v7  ;;  %vm594_vm9 = vweird.f32 %v578_v7  ;;  %v641_v6 = vpop.permute.xlu1 %640 }
 0x23b   :  { %736 = vperm.xlu1 %1316, %v1656_v47  }
 0x23c   :  { %v581_v10 = vpop.f32.mrf.mxu3  ;;  %v553_v14 = vpop.f32.mrf.mxu2 }
 0x23d   :  { %v582_v12 = vadd.f32 %v581_v10, %v550_v9  ;;  %v1330_v21 = vpop.eup %1329  ;;  %v554_v26 = vadd.f32 %v553_v14, %v516_v16 }
 0x23e   :  { %v589_v32 = vmul.f32 %v1330_v21, %v578_v7  ;;  %vm595_vm5 = vweird.f32 %v1330_v21 }
 0x23f   :  { %1331 = vrsqrt.f32 %v582_v12  ;;  %vm604_vm4 = vweird.f32 %v582_v12  ;;  %vm596_vm10 = vmor %vm594_vm9, %vm595_vm5 }
 0x240   :  { %v590_v37 = vmul.f32 %v1330_v21, %v589_v32  ;;  %v730_v32 = vld [vmem:[#allocation2 + $0x28] sm:$0xff] }
 0x242   :  { %v591_v40 = vmul.f32 0.5, %v590_v37 }
 0x244   :  { %v585_v28 = vpop.f32.mrf.mxu3  ;;  %v592_v48 = vsub.f32 1.5, %v591_v40 }
 0x245   :  { %v1332_v30 = vpop.eup %1331  ;;  %v586_v31 = vadd.f32 %v585_v28, %v554_v26  ;;  %v726_v26 = vld [vmem:[#allocation2 + $0x8] sm:$0xff]  ;;  %v727_v28 = vld [vmem:[#allocation2 + $0x10] sm:$0xff] }
 0x246   :  { %v599_v33 = vmul.f32 %v1332_v30, %v582_v12  ;;  %vm605_vm2 = vweird.f32 %v1332_v30  ;;  %v593_v56 = vmul.f32 %v1330_v21, %v592_v48 }
 0x247   :  { %1333 = vrsqrt.f32 %v586_v31  ;;  %vm606_vm6 = vmor %vm604_vm4, %vm605_vm2  ;;  %vm614_vm7 = vweird.f32 %v586_v31 }
 0x248   :  { %v600_v34 = vmul.f32 %v1332_v30, %v599_v33  ;;  %v597_v35 = vsel %vm596_vm10, %v1330_v21, %v593_v56 }
 0x249   :  { %v618_v42 = vmul.f32 %v597_v35, %v1606_v24  ;;  %v629_v24 = vld [vmem:[%s1772_s2 + $0x10] sm:$0xff] }
 0x24a   :  { %v601_v20 = vmul.f32 0.5, %v600_v34 }
 0x24c   :  { %v602_v44 = vsub.f32 1.5, %v601_v20 }
 0x24d   :  { %v1334_v17 = vpop.eup %1333 }
 0x24e   :  { %v609_v41 = vmul.f32 %v1334_v17, %v586_v31  ;;  %vm615_vm3 = vweird.f32 %v1334_v17  ;;  %v603_v51 = vmul.f32 %v1332_v30, %v602_v44  ;;  %v729_v31 = vld [vmem:[#allocation2 + $0x20] sm:$0xff] }
 0x24f   :  { %vm616_vm8 = vmor %vm614_vm7, %vm615_vm3 }
 0x250   :  { %v610_v45 = vmul.f32 %v1334_v17, %v609_v41  ;;  %v607_v58 = vsel %vm606_vm6, %v1332_v30, %v603_v51  ;;  %v728_v30 = vld [vmem:[#allocation2 + $0x18] sm:$0xff]  ;;  %v1438_v41 = vmov 2  }
 0x251   :  { %v619_v39 = vmul.f32 %v607_v58, %v1603_v23  ;;  %v628_v23 = vld [vmem:[%s1772_s2 + $0x8] sm:$0xff]  ;;  %1318 = vset.pattern.permute.xlu1 %v1438_v41 }
 0x252   :  { %v611_v50 = vmul.f32 0.5, %v610_v45  ;;  %843 = vperm.xlu1 %1318, %v1639_v15  }
 0x254   :  { %v612_v29 = vsub.f32 1.5, %v611_v50 }
 0x256   :  { %v613_v54 = vmul.f32 %v1334_v17, %v612_v29 }
 0x258   :  { %v617_v57 = vsel %vm616_vm8, %v1334_v17, %v613_v54 }
 0x259   :  { %v620_v25 = vmul.f32 %v617_v57, %v1613_v38  ;;  %v1677_v38 = vld [vmem:[%s1774_s4] sm:$0xff] }
 0x25a   :  { %635 = vperm.xlu2 %1315, %v1677_v38   ;;  %835 = vperm.xlu1 %1318, %v1651_v46  }
 0x25b   :  { %1255 = vmatpush.msk.msrb.mxu0 %vm97_vm1, %v620_v25 }
 0x25d   :  { %698 = vmatpush.msrb.mxu0 %v619_v39 }
 0x25f   :  { %699 = vmatpush.msrb.mxu0 %v618_v42 }
 0x260   :  { %1256 = vmatmul.msk.f32.vlgmr.msrb.gmra.mxu0 %vm87_vm0, %v627_v49 }
 0x262   :  { %1317 = vset.pattern.permute.xlu2 %v1437_v0  ;;  %827 = vperm.xlu1 %1318, %v1656_v47  }
 0x263   :  { %748 = vperm.xlu2 %1317, %v1645_v36  }
 0x268   :  { %1257 = vmatmul.msk.f32.gmra.mxu0 %vm87_vm0, %v628_v23 }
 0x26b   :  { %740 = vperm.xlu2 %1317, %v1663_v22  }
 0x270   :  { %1258 = vmatmul.msk.f32.gmra.mxu0 %vm87_vm0, %v629_v24  ;;  %v646_v2 = vpop.permute.xlu2 %645 }
 0x273   :  { %732 = vperm.xlu2 %1317, %v1677_v38  }
 0x278   :  { %1259 = vmatmul.msk.f32.gmra.mxu0 %vm87_vm0, %v630_v52  ;;  %v816_v52 = vld [vmem:[#allocation2 + $0x30] sm:$0xff] }
 0x27b   :  { %1319 = vset.pattern.permute.xlu2 %v1438_v41 }
 0x27c   :  { %839 = vperm.xlu2 %1319, %v1645_v36  }
 0x280   :  { %1260 = vmatmul.msk.f32.gmra.mxu0 %vm87_vm0, %v631_v53 }
 0x284   :  { %831 = vperm.xlu2 %1319, %v1663_v22  }
 0x288   :  { %1261 = vmatmul.msk.f32.gmra.mxu0 %vm87_vm0, %v632_v55  ;;  %v817_v55 = vld [vmem:[#allocation2 + $0x38] sm:$0xff] }
 0x28c   :  { %823 = vperm.xlu2 %1319, %v1677_v38  }
 0x29d   :  { %v753_v20 = vpop.permute.xlu1 %752 }
 0x2a5   :  { %v745_v45 = vpop.permute.xlu1 %744 }
 0x2ad   :  { %v737_v56 = vpop.permute.xlu1 %736 }
 0x2b4   :  { %v636_v8 = vpop.permute.xlu2 %635 }
 0x2bd   :  { %v749_v40 = vpop.permute.xlu2 %748 }
 0x2c5   :  { %v741_v48 = vpop.permute.xlu2 %740 }
 0x2cd   :  { %v733_v58 = vpop.permute.xlu2 %732 }
 0x2dd   :  { %v701_v59 = vpop.f32.mrf.mxu0 }
 0x2de   :  { %v702_v11 = vadd.f32 %v701_v59, %v636_v8  ;;  %v818_v59 = vld [vmem:[#allocation2 + $0x40] sm:$0xff] }
 0x2e5   :  { %v704_v60 = vpop.f32.mrf.mxu0 }
 0x2e6   :  { %v705_v9 = vadd.f32 %v704_v60, %v641_v6  ;;  %v819_v60 = vld [vmem:[#allocation2 + $0x48] sm:$0xff] }
 0x2ed   :  { %v707_v61 = vpop.f32.mrf.mxu0 }
 0x2ee   :  { %v708_v7 = vadd.f32 %v707_v61, %v646_v2  ;;  %v820_v61 = vld [vmem:[#allocation2 + $0x50] sm:$0xff]  ;;  %v840_v2 = vpop.permute.xlu2 %839 }
 0x2f5   :  { %v710_v19 = vpop.f32.mrf.mxu0 }
 0x2f6   :  { %v711_v5 = vadd.f32 %v710_v19, %v651_v63 }
 0x2fd   :  { %v713_v1 = vpop.f32.mrf.mxu0 }
 0x2fe   :  { %v714_v3 = vadd.f32 %v713_v1, %v656_v27  ;;  %v844_v1 = vpop.permute.xlu1 %843 }
 0x305   :  { %v716_v43 = vpop.f32.mrf.mxu0 }
 0x306   :  { %v717_v4 = vadd.f32 %v716_v43, %v661_v62  ;;  %v821_v62 = vld [vmem:[#allocation2 + $0x58] sm:$0xff]  ;;  %v1439_v43 = vmov 3  }
 0x307   :  { %1320 = vset.pattern.permute.xlu1 %v1439_v43  ;;  %1321 = vset.pattern.permute.xlu2 %v1439_v43 }
 0x308   :  { %1335 = vtanh.f32 %v717_v4  ;;  %933 = vperm.xlu1 %1320, %v1639_v15   ;;  %929 = vperm.xlu2 %1321, %v1645_v36   ;;  %v836_v4 = vpop.permute.xlu1 %835 }
 0x309   :  { %1337 = vtanh.f32 %v714_v3 }
 0x30a   :  { %1339 = vtanh.f32 %v711_v5  ;;  %v832_v5 = vpop.permute.xlu2 %831 }
 0x30b   :  { %1341 = vtanh.f32 %v708_v7 }
 0x30c   :  { %1343 = vtanh.f32 %v705_v9 }
 0x30d   :  { %1345 = vtanh.f32 %v702_v11 }
 0x30e   :  { %v1336_v10 = vpop.eup %1335 }
 0x30f   :  { %784 = vmatpush.msrb.mxu1 %v1336_v10  ;;  %v1338_v12 = vpop.eup %1337 }
 0x310   :  { %v1340_v13 = vpop.eup %1339  ;;  %925 = vperm.xlu1 %1320, %v1651_v46   ;;  %921 = vperm.xlu2 %1321, %v1663_v22   ;;  %v828_v10 = vpop.permute.xlu1 %827 }
 0x311   :  { %785 = vmatpush.msrb.mxu1 %v1338_v12  ;;  %v1342_v14 = vpop.eup %1341 }
 0x312   :  { %v1344_v16 = vpop.eup %1343  ;;  %v824_v12 = vpop.permute.xlu2 %823 }
 0x313   :  { %786 = vmatpush.msrb.mxu1 %v1340_v13  ;;  %v1346_v21 = vpop.eup %1345 }
 0x315   :  { %787 = vmatpush.msrb.mxu1 %v1342_v14 }
 0x317   :  { %788 = vmatpush.msrb.mxu1 %v1344_v16 }
 0x318   :  { %917 = vperm.xlu1 %1320, %v1656_v47   ;;  %913 = vperm.xlu2 %1321, %v1677_v38  }
 0x319   :  { %789 = vmatpush.msrb.mxu1 %v1346_v21 }
 0x31a   :  { %1262 = vmatmul.msk.f32.vlgmr.msrb.gmra.mxu1 %vm755_vm11, %v725_v18 }
 0x322   :  { %1263 = vmatmul.msk.f32.gmra.mxu1 %vm755_vm11, %v726_v26 }
 0x32a   :  { %1264 = vmatmul.msk.f32.gmra.mxu1 %vm755_vm11, %v727_v28 }
 0x332   :  { %1265 = vmatmul.msk.f32.gmra.mxu1 %vm755_vm11, %v728_v30  ;;  %v906_v30 = vld [vmem:[#allocation2 + $0x60] sm:$0xff] }
 0x33a   :  { %1266 = vmatmul.msk.f32.gmra.mxu1 %vm755_vm11, %v729_v31 }
 0x342   :  { %1267 = vmatmul.msk.f32.gmra.mxu1 %vm755_vm11, %v730_v32  ;;  %v907_v32 = vld [vmem:[#allocation2 + $0x68] sm:$0xff] }
 0x397   :  { %v791_v33 = vpop.f32.mrf.mxu1 }
 0x398   :  { %v792_v39 = vadd.f32 %v791_v33, %v733_v58  ;;  %v908_v33 = vld [vmem:[#allocation2 + $0x70] sm:$0xff] }
 0x39f   :  { %v794_v34 = vpop.f32.mrf.mxu1 }
 0x3a0   :  { %v795_v25 = vadd.f32 %v794_v34, %v737_v56  ;;  %v909_v34 = vld [vmem:[#allocation2 + $0x78] sm:$0xff] }
 0x3a7   :  { %v797_v37 = vpop.f32.mrf.mxu1 }
 0x3a8   :  { %v798_v57 = vadd.f32 %v797_v37, %v741_v48  ;;  %v910_v37 = vld [vmem:[#allocation2 + $0x80] sm:$0xff]  ;;  %v930_v48 = vpop.permute.xlu2 %929 }
 0x3af   :  { %v800_v17 = vpop.f32.mrf.mxu1 }
 0x3b0   :  { %v801_v54 = vadd.f32 %v800_v17, %v745_v45 }
 0x3b7   :  { %v803_v44 = vpop.f32.mrf.mxu1 }
 0x3b8   :  { %v804_v29 = vadd.f32 %v803_v44, %v749_v40  ;;  %v934_v44 = vpop.permute.xlu1 %933 }
 0x3bf   :  { %v806_v50 = vpop.f32.mrf.mxu1 }
 0x3c0   :  { %v807_v51 = vadd.f32 %v806_v50, %v753_v20  ;;  %v911_v20 = vld [vmem:[#allocation2 + $0x88] sm:$0xff]  ;;  %v1440_v50 = vmov 4  }
 0x3c1   :  { %1322 = vset.pattern.permute.xlu1 %v1440_v50  ;;  %1323 = vset.pattern.permute.xlu2 %v1440_v50 }
 0x3c2   :  { %1347 = vtanh.f32 %v807_v51  ;;  %1023 = vperm.xlu1 %1322, %v1639_v15   ;;  %1019 = vperm.xlu2 %1323, %v1645_v36   ;;  %v926_v51 = vpop.permute.xlu1 %925 }
 0x3c3   :  { %1349 = vtanh.f32 %v804_v29 }
 0x3c4   :  { %1351 = vtanh.f32 %v801_v54  ;;  %v922_v54 = vpop.permute.xlu2 %921 }
 0x3c5   :  { %1353 = vtanh.f32 %v798_v57 }
 0x3c6   :  { %1355 = vtanh.f32 %v795_v25 }
 0x3c7   :  { %1357 = vtanh.f32 %v792_v39 }
 0x3c8   :  { %v1348_v35 = vpop.eup %1347 }
 0x3c9   :  { %874 = vmatpush.msrb.mxu2 %v1348_v35  ;;  %v1350_v42 = vpop.eup %1349 }
 0x3ca   :  { %v1352_v49 = vpop.eup %1351  ;;  %1015 = vperm.xlu1 %1322, %v1651_v46   ;;  %1011 = vperm.xlu2 %1323, %v1663_v22   ;;  %v918_v35 = vpop.permute.xlu1 %917 }
 0x3cb   :  { %875 = vmatpush.msrb.mxu2 %v1350_v42  ;;  %v1354_v23 = vpop.eup %1353 }
 0x3cc   :  { %v1356_v24 = vpop.eup %1355  ;;  %v914_v42 = vpop.permute.xlu2 %913 }
 0x3cd   :  { %876 = vmatpush.msrb.mxu2 %v1352_v49  ;;  %v1358_v53 = vpop.eup %1357 }
 0x3cf   :  { %877 = vmatpush.msrb.mxu2 %v1354_v23 }
 0x3d1   :  { %878 = vmatpush.msrb.mxu2 %v1356_v24 }
 0x3d2   :  { %1007 = vperm.xlu1 %1322, %v1656_v47   ;;  %1003 = vperm.xlu2 %1323, %v1677_v38  }
 0x3d3   :  { %879 = vmatpush.msrb.mxu2 %v1358_v53 }
 0x3d4   :  { %1268 = vmatmul.msk.f32.vlgmr.msrb.gmra.mxu2 %vm755_vm11, %v816_v52 }
 0x3dc   :  { %1269 = vmatmul.msk.f32.gmra.mxu2 %vm755_vm11, %v817_v55 }
 0x3e4   :  { %1270 = vmatmul.msk.f32.gmra.mxu2 %vm755_vm11, %v818_v59 }
 0x3ec   :  { %1271 = vmatmul.msk.f32.gmra.mxu2 %vm755_vm11, %v819_v60  ;;  %v996_v60 = vld [vmem:[#allocation2 + $0x90] sm:$0xff] }
 0x3f4   :  { %1272 = vmatmul.msk.f32.gmra.mxu2 %vm755_vm11, %v820_v61 }
 0x3fc   :  { %1273 = vmatmul.msk.f32.gmra.mxu2 %vm755_vm11, %v821_v62  ;;  %v997_v62 = vld [vmem:[#allocation2 + $0x98] sm:$0xff] }
 0x457   :  { %v881_v19 = vpop.f32.mrf.mxu2 }
 0x458   :  { %v882_v16 = vadd.f32 %v881_v19, %v824_v12  ;;  %v998_v19 = vld [vmem:[#allocation2 + $0xa0] sm:$0xff] }
 0x45f   :  { %v884_v63 = vpop.f32.mrf.mxu2 }
 0x460   :  { %v885_v13 = vadd.f32 %v884_v63, %v828_v10  ;;  %v999_v63 = vld [vmem:[#allocation2 + $0xa8] sm:$0xff] }
 0x467   :  { %v887_v0 = vpop.f32.mrf.mxu2 }
 0x468   :  { %v888_v11 = vadd.f32 %v887_v0, %v832_v5  ;;  %v1000_v0 = vld [vmem:[#allocation2 + $0xb0] sm:$0xff] }
 0x46f   :  { %v890_v27 = vpop.f32.mrf.mxu2 }
 0x470   :  { %v891_v9 = vadd.f32 %v890_v27, %v836_v4  ;;  %v1024_v4 = vpop.permute.xlu1 %1023 }
 0x477   :  { %v893_v3 = vpop.f32.mrf.mxu2 }
 0x478   :  { %v894_v7 = vadd.f32 %v893_v3, %v840_v2  ;;  %v1441_v3 = vmov 5  }
 0x479   :  { %1324 = vset.pattern.permute.xlu1 %v1441_v3  ;;  %1325 = vset.pattern.permute.xlu2 %v1441_v3 }
 0x47a   :  { %1113 = vperm.xlu1 %1324, %v1639_v15   ;;  %1326 = vset.pattern.permute.xlu0 %v1441_v3 }
 0x47b   :  { %1109 = vperm.xlu2 %1325, %v1645_v36   ;;  %1105 = vperm.xlu0 %1326, %v1651_v46  }
 0x47f   :  { %v896_v6 = vpop.f32.mrf.mxu2 }
 0x480   :  { %v897_v8 = vadd.f32 %v896_v6, %v844_v1  ;;  %v1001_v1 = vld [vmem:[#allocation2 + $0xb8] sm:$0xff]  ;;  %v1020_v6 = vpop.permute.xlu2 %1019 }
 0x482   :  { %1359 = vtanh.f32 %v897_v8  ;;  %1101 = vperm.xlu1 %1324, %v1663_v22   ;;  %v1016_v8 = vpop.permute.xlu1 %1015 }
 0x483   :  { %1361 = vtanh.f32 %v894_v7  ;;  %1097 = vperm.xlu2 %1325, %v1656_v47  }
 0x484   :  { %1363 = vtanh.f32 %v891_v9 }
 0x485   :  { %1365 = vtanh.f32 %v888_v11 }
 0x486   :  { %1367 = vtanh.f32 %v885_v13 }
 0x487   :  { %1369 = vtanh.f32 %v882_v16 }
 0x488   :  { %v1360_v14 = vpop.eup %1359  ;;  %v1012_v9 = vpop.permute.xlu2 %1011 }
 0x489   :  { %964 = vmatpush.msrb.mxu3 %v1360_v14  ;;  %v1362_v18 = vpop.eup %1361 }
 0x48a   :  { %v1364_v21 = vpop.eup %1363  ;;  %1093 = vperm.xlu1 %1324, %v1677_v38   ;;  %v1008_v15 = vpop.permute.xlu1 %1007 }
 0x48b   :  { %965 = vmatpush.msrb.mxu3 %v1362_v18  ;;  %v1366_v26 = vpop.eup %1365 }
 0x48c   :  { %v1368_v28 = vpop.eup %1367 }
 0x48d   :  { %966 = vmatpush.msrb.mxu3 %v1364_v21  ;;  %v1370_v31 = vpop.eup %1369 }
 0x48f   :  { %967 = vmatpush.msrb.mxu3 %v1366_v26 }
 0x490   :  { %v1004_v36 = vpop.permute.xlu2 %1003 }
 0x491   :  { %968 = vmatpush.msrb.mxu3 %v1368_v28  ;;  %v1086_v28 = vld [vmem:[#allocation2 + $0xc0] sm:$0xff] }
 0x493   :  { %969 = vmatpush.msrb.mxu3 %v1370_v31  ;;  %v1087_v31 = vld [vmem:[#allocation2 + $0xc8] sm:$0xff] }
 0x494   :  { %1274 = vmatmul.msk.f32.vlgmr.msrb.gmra.mxu3 %vm755_vm11, %v906_v30 }
 0x49c   :  { %1275 = vmatmul.msk.f32.gmra.mxu3 %vm755_vm11, %v907_v32  ;;  %v1088_v32 = vld [vmem:[#allocation2 + $0xd0] sm:$0xff] }
 0x4a4   :  { %1276 = vmatmul.msk.f32.gmra.mxu3 %vm755_vm11, %v908_v33  ;;  %v1089_v33 = vld [vmem:[#allocation2 + $0xd8] sm:$0xff] }
 0x4ac   :  { %1277 = vmatmul.msk.f32.gmra.mxu3 %vm755_vm11, %v909_v34  ;;  %v1090_v34 = vld [vmem:[#allocation2 + $0xe0] sm:$0xff] }
 0x4b4   :  { %1278 = vmatmul.msk.f32.gmra.mxu3 %vm755_vm11, %v910_v37  ;;  %v1091_v37 = vld [vmem:[#allocation2 + $0xe8] sm:$0xff] }
 0x4bc   :  { %1279 = vmatmul.msk.f32.gmra.mxu3 %vm755_vm11, %v911_v20 }
 0x517   :  { %v971_v17 = vpop.f32.mrf.mxu3 }
 0x518   :  { %v972_v24 = vadd.f32 %v971_v17, %v914_v42 }
 0x51f   :  { %v974_v40 = vpop.f32.mrf.mxu3 }
 0x520   :  { %v975_v49 = vadd.f32 %v974_v40, %v918_v35 }
 0x527   :  { %v977_v41 = vpop.f32.mrf.mxu3 }
 0x528   :  { %v978_v39 = vadd.f32 %v977_v41, %v922_v54 }
 0x52f   :  { %v980_v45 = vpop.f32.mrf.mxu3 }
 0x530   :  { %v981_v25 = vadd.f32 %v980_v45, %v926_v51 }
 0x537   :  { %v983_v29 = vpop.f32.mrf.mxu3 }
 0x538   :  { %v984_v57 = vadd.f32 %v983_v29, %v930_v48  ;;  %v1110_v48 = vpop.permute.xlu2 %1109  ;;  %v1106_v29 = vpop.permute.xlu0 %1105 }
 0x53f   :  { %v986_v56 = vpop.f32.mrf.mxu3 }
 0x540   :  { %v987_v58 = vadd.f32 %v986_v56, %v934_v44  ;;  %v1114_v44 = vpop.permute.xlu1 %1113 }
 0x542   :  { %1371 = vtanh.f32 %v987_v58  ;;  %v1098_v58 = vpop.permute.xlu2 %1097 }
 0x543   :  { %1373 = vtanh.f32 %v984_v57 }
 0x544   :  { %1375 = vtanh.f32 %v981_v25 }
 0x545   :  { %1377 = vtanh.f32 %v978_v39 }
 0x546   :  { %1379 = vtanh.f32 %v975_v49 }
 0x547   :  { %1381 = vtanh.f32 %v972_v24 }
 0x548   :  { %v1372_v23 = vpop.eup %1371  ;;  %v1102_v50 = vpop.permute.xlu1 %1101 }
 0x549   :  { %1054 = vmatpush.msra.mxu0 %v1372_v23  ;;  %v1374_v52 = vpop.eup %1373 }
 0x54a   :  { %v1376_v53 = vpop.eup %1375 }
 0x54b   :  { %1055 = vmatpush.msra.mxu0 %v1374_v52  ;;  %v1378_v55 = vpop.eup %1377 }
 0x54c   :  { %v1380_v59 = vpop.eup %1379 }
 0x54d   :  { %1056 = vmatpush.msra.mxu0 %v1376_v53  ;;  %v1382_v61 = vpop.eup %1381 }
 0x54f   :  { %1057 = vmatpush.msra.mxu0 %v1378_v55  ;;  %v1176_v55 = vld [vmem:[#allocation2 + $0xf0] sm:$0xff] }
 0x550   :  { %v1094_v35 = vpop.permute.xlu1 %1093 }
 0x551   :  { %1058 = vmatpush.msra.mxu0 %v1380_v59 }
 0x553   :  { %1059 = vmatpush.msra.mxu0 %v1382_v61  ;;  %v1177_v61 = vld [vmem:[#allocation2 + $0xf8] sm:$0xff] }
 0x554   :  { %1280 = vmatmul.msk.f32.vlgmr.msra.gmra.mxu0 %vm755_vm11, %v996_v60  ;;  %v1442_v60 = vmov 6  }
 0x555   :  { %1327 = vset.pattern.permute.xlu2 %v1442_v60  ;;  %1328 = vset.pattern.permute.xlu0 %v1442_v60 }
 0x556   :  { %1183 = vperm.xlu2 %1327, %v1677_v38  }
 0x55c   :  { %1281 = vmatmul.msk.f32.gmra.mxu0 %vm755_vm11, %v997_v62  ;;  %v1178_v62 = vld [vmem:[#allocation2 + $0x100] sm:$0xff] }
 0x564   :  { %1282 = vmatmul.msk.f32.gmra.mxu0 %vm755_vm11, %v998_v19  ;;  %v1179_v19 = vld [vmem:[#allocation2 + $0x108] sm:$0xff] }
 0x56c   :  { %1283 = vmatmul.msk.f32.gmra.mxu0 %vm755_vm11, %v999_v63  ;;  %v1180_v63 = vld [vmem:[#allocation2 + $0x110] sm:$0xff] }
 0x574   :  { %1284 = vmatmul.msk.f32.gmra.mxu0 %vm755_vm11, %v1000_v0  ;;  %v1181_v0 = vld [vmem:[#allocation2 + $0x118] sm:$0xff] }
 0x57c   :  { %1285 = vmatmul.msk.f32.gmra.mxu0 %vm755_vm11, %v1001_v1 }
 0x5b0   :  { %v1184_v1 = vpop.permute.xlu2 %1183 }
 0x5d1   :  { %v1061_v27 = vpop.f32.mrf.mxu0 }
 0x5d2   :  { %v1062_v18 = vadd.f32 %v1061_v27, %v1004_v36 }
 0x5d9   :  { %v1064_v2 = vpop.f32.mrf.mxu0 }
 0x5da   :  { %v1065_v46 = vadd.f32 %v1064_v2, %v1008_v15 }
 0x5e1   :  { %v1067_v43 = vpop.f32.mrf.mxu0 }
 0x5e2   :  { %v1068_v14 = vadd.f32 %v1067_v43, %v1012_v9 }
 0x5e9   :  { %v1070_v5 = vpop.f32.mrf.mxu0 }
 0x5ea   :  { %v1071_v13 = vadd.f32 %v1070_v5, %v1016_v8 }
 0x5f1   :  { %v1073_v7 = vpop.f32.mrf.mxu0 }
 0x5f2   :  { %v1074_v11 = vadd.f32 %v1073_v7, %v1020_v6 }
 0x5f9   :  { %v1076_v10 = vpop.f32.mrf.mxu0 }
 0x5fa   :  { %v1077_v12 = vadd.f32 %v1076_v10, %v1024_v4 }
 0x5fc   :  { %1383 = vtanh.f32 %v1077_v12 }
 0x5fd   :  { %1385 = vtanh.f32 %v1074_v11 }
 0x5fe   :  { %1387 = vtanh.f32 %v1071_v13 }
 0x5ff   :  { %1389 = vtanh.f32 %v1068_v14 }
 0x600   :  { %1391 = vtanh.f32 %v1065_v46 }
 0x601   :  { %1393 = vtanh.f32 %v1062_v18 }
 0x602   :  { %v1384_v16 = vpop.eup %1383 }
 0x603   :  { %1144 = vmatpush.msra.mxu1 %v1384_v16  ;;  %v1386_v47 = vpop.eup %1385 }
 0x604   :  { %v1388_v22 = vpop.eup %1387 }
 0x605   :  { %1145 = vmatpush.msra.mxu1 %v1386_v47  ;;  %v1390_v21 = vpop.eup %1389 }
 0x606   :  { %v1392_v26 = vpop.eup %1391 }
 0x607   :  { %1146 = vmatpush.msra.mxu1 %v1388_v22  ;;  %v1394_v30 = vpop.eup %1393 }
 0x609   :  { %1147 = vmatpush.msra.mxu1 %v1390_v21 }
 0x60b   :  { %1148 = vmatpush.msra.mxu1 %v1392_v26 }
 0x60d   :  { %1149 = vmatpush.msra.mxu1 %v1394_v30 }
 0x60e   :  { %1286 = vmatmul.msk.f32.vlgmr.msra.gmra.mxu1 %vm755_vm11, %v1086_v28 }
 0x616   :  { %1287 = vmatmul.msk.f32.gmra.mxu1 %vm755_vm11, %v1087_v31 }
 0x61e   :  { %1288 = vmatmul.msk.f32.gmra.mxu1 %vm755_vm11, %v1088_v32 }
 0x626   :  { %1289 = vmatmul.msk.f32.gmra.mxu1 %vm755_vm11, %v1089_v33 }
 0x62e   :  { %1290 = vmatmul.msk.f32.gmra.mxu1 %vm755_vm11, %v1090_v34 }
 0x636   :  { %1291 = vmatmul.msk.f32.gmra.mxu1 %vm755_vm11, %v1091_v37 }
 0x68b   :  { %v1151_v20 = vpop.f32.mrf.mxu1 }
 0x68c   :  { %v1152_v49 = vadd.f32 %v1151_v20, %v1094_v35 }
 0x693   :  { %v1154_v17 = vpop.f32.mrf.mxu1 }
 0x694   :  { %v1155_v39 = vadd.f32 %v1154_v17, %v1098_v58 }
 0x69b   :  { %v1157_v40 = vpop.f32.mrf.mxu1 }
 0x69c   :  { %v1158_v25 = vadd.f32 %v1157_v40, %v1102_v50 }
 0x6a3   :  { %v1160_v41 = vpop.f32.mrf.mxu1 }
 0x6a4   :  { %v1161_v57 = vadd.f32 %v1160_v41, %v1106_v29 }
 0x6ab   :  { %v1163_v45 = vpop.f32.mrf.mxu1 }
 0x6ac   :  { %v1164_v54 = vadd.f32 %v1163_v45, %v1110_v48 }
 0x6b3   :  { %v1166_v51 = vpop.f32.mrf.mxu1 }
 0x6b4   :  { %v1167_v56 = vadd.f32 %v1166_v51, %v1114_v44 }
 0x6b6   :  { %1395 = vtanh.f32 %v1167_v56 }
 0x6b7   :  { %1397 = vtanh.f32 %v1164_v54 }
 0x6b8   :  { %1399 = vtanh.f32 %v1161_v57 }
 0x6b9   :  { %1401 = vtanh.f32 %v1158_v25 }
 0x6ba   :  { %1403 = vtanh.f32 %v1155_v39 }
 0x6bb   :  { %1405 = vtanh.f32 %v1152_v49 }
 0x6bc   :  { %v1396_v42 = vpop.eup %1395 }
 0x6bd   :  { %1229 = vmatpush.msra.mxu2 %v1396_v42  ;;  %v1398_v23 = vpop.eup %1397 }
 0x6be   :  { %v1400_v24 = vpop.eup %1399 }
 0x6bf   :  { %1230 = vmatpush.msra.mxu2 %v1398_v23  ;;  %v1402_v52 = vpop.eup %1401 }
 0x6c0   :  { %v1404_v53 = vpop.eup %1403 }
 0x6c1   :  { %1231 = vmatpush.msra.mxu2 %v1400_v24  ;;  %v1406_v59 = vpop.eup %1405 }
 0x6c3   :  { %1232 = vmatpush.msra.mxu2 %v1402_v52 }
 0x6c5   :  { %1233 = vmatpush.msra.mxu2 %v1404_v53 }
 0x6c7   :  { %1234 = vmatpush.msra.mxu2 %v1406_v59 }
 0x6c8   :  { %1292 = vmatmul.msk.f32.vlgmr.msra.gmra.mxu2 %vm755_vm11, %v1176_v55 }
 0x6d0   :  { %1293 = vmatmul.msk.f32.gmra.mxu2 %vm755_vm11, %v1177_v61 }
 0x6d8   :  { %1294 = vmatmul.msk.f32.gmra.mxu2 %vm755_vm11, %v1178_v62 }
 0x6e0   :  { %1295 = vmatmul.msk.f32.gmra.mxu2 %vm755_vm11, %v1179_v19 }
 0x6e8   :  { %1296 = vmatmul.msk.f32.gmra.mxu2 %vm755_vm11, %v1180_v63 }
 0x6f0   :  { %1297 = vmatmul.msk.f32.gmra.mxu2 %vm755_vm11, %v1181_v0 }
 0x74b   :  { %v1236_v27 = vpop.f32.mrf.mxu2 }
 0x74c   :  { %v1237_v2 = vadd.f32 %v1236_v27, %v1184_v1 }
 0x74e   :  { %1249 = vst [vmem:[%s1775_s5] sm:$0xff] %v1237_v2 }
 0x753   :  { %v1239_v38 = vpop.f32.mrf.mxu2 }
 0x75b   :  { %v1241_v43 = vpop.f32.mrf.mxu2 }
 0x763   :  { %v1243_v3 = vpop.f32.mrf.mxu2 }
 0x76b   :  { %v1245_v4 = vpop.f32.mrf.mxu2 }
 0x773   :  { %v1247_v5 = vpop.f32.mrf.mxu2 }
 0x774   :  { %1254 = vsyncpa [#allocation3], 1 }

</bundles_post_ra>
